<compile_context>
chip_gen: v6e
topology: v6e:2x2x1
jax: 0.10.0
libtpu: 0.0.40
codegen_flags: <defaults>
</compile_context>

<pallas_src>
import jax
import jax.numpy as jnp
from jax.experimental import pallas as pl
from jax.experimental.pallas import tpu as pltpu


def _round_up(x: int, m: int) -> int:
    return ((x + m - 1) // m) * m


def _make_warp_kernel(num_contours: int):
    def kernel(*refs):
        # refs = (shifts_ref, x_0, ..., x_{C-1}, o_0, ..., o_{C-1})
        s_ref = refs[0]
        x_refs = refs[1:1 + num_contours]
        o_refs = refs[1 + num_contours:]
        shifts = s_ref[...]                       # (C, D) — one tiny VMEM load
        for i in range(num_contours):             # C is small; unrolled
            # (N_i, D) + (1, D): broadcast the per-contour shift over points.
            o_refs[i][...] = x_refs[i][...] + shifts[i:i + 1, :]
    return kernel


@jax.jit
def _contour_warper_jit(src_contours, src_shifts_dst):
    C = len(src_contours)
    D = src_contours[0].shape[1]
    dtype = src_contours[0].dtype

    shifts = src_shifts_dst.astype(dtype)
    contours = tuple(c.astype(dtype) for c in src_contours)

    # --- estimate resident VMEM (arrays are lane-padded to (sublane, 128)) ---
    itemsize = jnp.dtype(dtype).itemsize
    sublane = max(8, 32 // itemsize)              # 8 f32, 16 bf16, 32 i8

    def padded_bytes(shape):
        rows = shape[0] if len(shape) >= 2 else 1
        cols = shape[-1]
        return _round_up(rows, sublane) * _round_up(cols, 128) * itemsize

    vmem_need = sum(padded_bytes(c.shape) for c in contours) * 2   # in + out
    vmem_need += padded_bytes(shifts.shape)

    compiler_params = None
    if vmem_need > 12 * (1 << 20):
        # Raise the scoped-VMEM limit (v5e default is only 16 MiB); stay well
        # under v7x's 64 MiB physical VMEM.
        compiler_params = pltpu.CompilerParams(
            vmem_limit_bytes=int(min(vmem_need + 4 * (1 << 20), 48 * (1 << 20)))
        )

    vmem_spec = pl.BlockSpec(memory_space=pltpu.MemorySpace.VMEM)

    out = pl.pallas_call(
        _make_warp_kernel(C),
        out_shape=tuple(jax.ShapeDtypeStruct(c.shape, dtype) for c in contours),
        in_specs=[vmem_spec] * (1 + C),
        out_specs=tuple([vmem_spec] * C),
        compiler_params=compiler_params,
    )(shifts, *contours)

    return list(out)


def contour_warper(src_contours, src_shifts_dst):
    """Pallas equivalent of ContourWarper.forward.

    Args:
      src_contours: list of (N_i, D) float arrays (the source contours).
      src_shifts_dst: (C, D) array of per-contour shifts.
    Returns:
      list of (N_i, D) arrays: shifted source contours.
    """
    return _contour_warper_jit(tuple(src_contours), src_shifts_dst)


def _check(src_contours, src_shifts_dst):
    shifted = contour_warper(src_contours, src_shifts_dst)
    shifted = [jax.block_until_ready(s) for s in shifted]
    for i in range(len(src_contours)):
        ref = src_contours[i] + src_shifts_dst[i]
        if shifted[i].shape != ref.shape or not bool(
            jnp.allclose(shifted[i], ref, atol=1e-6, rtol=1e-6)
        ):
            return False
    return True


if __name__ == "__main__":
    key = jax.random.PRNGKey(0)

    # Case 1: small deterministic example matching ContourWarper(num_src_contours=3).
    num_src_contours = 3
    contour_lens = [8, 12, 16]
    D = 2
    keys = jax.random.split(key, num_src_contours + 1)
    src_contours = [
        jax.random.normal(keys[i], (contour_lens[i], D), dtype=jnp.float32)
        for i in range(num_src_contours)
    ]
    src_shifts_dst = jax.random.normal(
        keys[-1], (num_src_contours, D), dtype=jnp.float32
    )
    ok = _check(src_contours, src_shifts_dst)

    # Case 2: larger, ragged contours (still small — a few hundred KiB total).
    num_src_contours2 = 4
    contour_lens2 = [700, 1100, 1500, 1800]
    keys2 = jax.random.split(jax.random.PRNGKey(1), num_src_contours2 + 1)
    src_contours2 = [
        jax.random.normal(keys2[i], (contour_lens2[i], D), dtype=jnp.float32)
        for i in range(num_src_contours2)
    ]
    src_shifts_dst2 = jax.random.normal(
        keys2[-1], (num_src_contours2, D), dtype=jnp.float32
    )
    ok = ok and _check(src_contours2, src_shifts_dst2)

    if ok:
        print("KERNEL_OK")
    else:
        raise SystemExit("mismatch vs reference")
</pallas_src>

<mosaic_0001>
module attributes {stable_mosaic.version = 11 : i64} {
  func.func @kernel(%arg0: memref<3x2xf32, #tpu.memory_space<vmem>>, %arg1: memref<8x2xf32, #tpu.memory_space<vmem>>, %arg2: memref<12x2xf32, #tpu.memory_space<vmem>>, %arg3: memref<16x2xf32, #tpu.memory_space<vmem>>, %arg4: memref<8x2xf32, #tpu.memory_space<vmem>>, %arg5: memref<12x2xf32, #tpu.memory_space<vmem>>, %arg6: memref<16x2xf32, #tpu.memory_space<vmem>>) attributes {dimension_semantics = [], scalar_prefetch = 0 : i64, scratch_operands = 0 : i64, tpu.core_type = #tpu.core_type<tc>} {
    %c0 = arith.constant 0 : index
    %c0_0 = arith.constant 0 : index
    %0 = vector.load %arg0[%c0, %c0_0] : memref<3x2xf32, #tpu.memory_space<vmem>>, vector<3x2xf32>
    %c0_1 = arith.constant 0 : index
    %c0_2 = arith.constant 0 : index
    %1 = vector.load %arg1[%c0_1, %c0_2] : memref<8x2xf32, #tpu.memory_space<vmem>>, vector<8x2xf32>
    %2 = vector.extract_strided_slice %0 {offsets = [0, 0], sizes = [1, 2], strides = [1, 1]} : vector<3x2xf32> to vector<1x2xf32>
    %3 = vector.broadcast %2 : vector<1x2xf32> to vector<8x2xf32>
    %4 = arith.addf %1, %3 : vector<8x2xf32>
    %c0_3 = arith.constant 0 : index
    %c0_4 = arith.constant 0 : index
    %5 = vector.load %arg4[%c0_3, %c0_4] : memref<8x2xf32, #tpu.memory_space<vmem>>, vector<8x2xf32>
    tpu.vector_store %arg4[%c0_3, %c0_4], %4 {strides = array<i32>} : memref<8x2xf32, #tpu.memory_space<vmem>>, vector<8x2xf32>,
    %c0_5 = arith.constant 0 : index
    %c0_6 = arith.constant 0 : index
    %6 = vector.load %arg2[%c0_5, %c0_6] : memref<12x2xf32, #tpu.memory_space<vmem>>, vector<12x2xf32>
    %7 = vector.extract_strided_slice %0 {offsets = [1, 0], sizes = [1, 2], strides = [1, 1]} : vector<3x2xf32> to vector<1x2xf32>
    %8 = vector.broadcast %7 : vector<1x2xf32> to vector<12x2xf32>
    %9 = arith.addf %6, %8 : vector<12x2xf32>
    %c0_7 = arith.constant 0 : index
    %c0_8 = arith.constant 0 : index
    %10 = vector.load %arg5[%c0_7, %c0_8] : memref<12x2xf32, #tpu.memory_space<vmem>>, vector<12x2xf32>
    tpu.vector_store %arg5[%c0_7, %c0_8], %9 {strides = array<i32>} : memref<12x2xf32, #tpu.memory_space<vmem>>, vector<12x2xf32>,
    %c0_9 = arith.constant 0 : index
    %c0_10 = arith.constant 0 : index
    %11 = vector.load %arg3[%c0_9, %c0_10] : memref<16x2xf32, #tpu.memory_space<vmem>>, vector<16x2xf32>
    %12 = vector.extract_strided_slice %0 {offsets = [2, 0], sizes = [1, 2], strides = [1, 1]} : vector<3x2xf32> to vector<1x2xf32>
    %13 = vector.broadcast %12 : vector<1x2xf32> to vector<16x2xf32>
    %14 = arith.addf %11, %13 : vector<16x2xf32>
    %c0_11 = arith.constant 0 : index
    %c0_12 = arith.constant 0 : index
    %15 = vector.load %arg6[%c0_11, %c0_12] : memref<16x2xf32, #tpu.memory_space<vmem>>, vector<16x2xf32>
    tpu.vector_store %arg6[%c0_11, %c0_12], %14 {strides = array<i32>} : memref<16x2xf32, #tpu.memory_space<vmem>>, vector<16x2xf32>,
    return
  }
}

</mosaic_0001>

<bundles_post_ra>
// kernel: _contour_warper_jit.1
= control target key start
LH: loop header
LB: loop body
LE: loop exit
PB: predicated region body
PF: predicated region fallthrough
CT: control target
= control target key end

     0   :  { %v22_v0 = vlaneseq  ;;  %vm27_vm0 = vcmask 15360   ;;  %vm38_vm1 = vcmask 11264   ;;  %s130_s0 = inlined_call_operand.vmem [shape: f32[3,2], index: 0, kind: input, shape index: {}]   ;;  %s131_s1 = inlined_call_operand.vmem [shape: f32[8,2], index: 1, kind: input, shape index: {}]   ;;  %s132_s2 = inlined_call_operand.vmem [shape: f32[12,2], index: 2, kind: input, shape index: {}]   ;;  %s133_s3 = inlined_call_operand.vmem [shape: f32[16,2], index: 3, kind: input, shape index: {}]   ;;  %s134_s4 = inlined_call_operand.vmem [shape: f32[8,2], index: 4, kind: output, shape index: {0}]   ;;  %s135_s5 = inlined_call_operand.vmem [shape: f32[12,2], index: 5, kind: output, shape index: {1}]   ;;  %s136_s6 = inlined_call_operand.vmem [shape: f32[16,2], index: 6, kind: output, shape index: {2}]  }
   0x1   :  { %v20_v2 = vld [vmem:[%s130_s0] sm:$0x7]  ;;  %v30_v8 = vld [vmem:[%s132_s2 + $0x8] sm:$0xf] }
   0x2   :  { %v23_v1 = vshrl.u32 %v22_v0, 7  ;;  %v21_v3 = vld [vmem:[%s131_s1] sm:$0xff]  ;;  %v41_v13 = vld [vmem:[%s133_s3 + $0x8] sm:$0xff] }
   0x3   :  { %v29_v7 = vld [vmem:[%s132_s2] sm:$0xff] }
   0x4   :  { %v24_v4 = vsub.s32 0, %v23_v1  ;;  %v33_v5 = vsub.s32 1, %v23_v1  ;;  %v44_v6 = vsub.s32 2, %v23_v1  ;;  %v40_v9 = vld [vmem:[%s133_s3] sm:$0xff] }
   0x6   :  { %v25_v10 = vrot.slane %v20_v2, %v24_v4  ;;  %v34_v11 = vrot.slane %v20_v2, %v33_v5  ;;  %v45_v12 = vrot.slane %v20_v2, %v44_v6 }
   0x8   :  { %v26_v14 = vadd.f32 %v25_v10, %v21_v3  ;;  %v35_v15 = vadd.f32 %v34_v11, %v29_v7  ;;  %v36_v16 = vadd.f32 %v34_v11, %v30_v8  ;;  %v46_v17 = vadd.f32 %v45_v12, %v40_v9 }
   0x9   :  { %v47_v18 = vadd.f32 %v45_v12, %v41_v13 }
   0xa   :  { %28 = vst.msk [vmem:[%s134_s4] sm:$0xff] %vm27_vm0, %v26_v14  ;;  %37 = vst.msk [vmem:[%s135_s5] sm:$0xff] %vm27_vm0, %v35_v15 }
   0xb   :  { %39 = vst.msk [vmem:[%s135_s5 + $0x8] sm:$0xf] %vm38_vm1, %v36_v16 }
   0xc   :  { %48 = vst.msk [vmem:[%s136_s6] sm:$0xff] %vm27_vm0, %v46_v17  ;;  %49 = vst.msk [vmem:[%s136_s6 + $0x8] sm:$0xff] %vm27_vm0, %v47_v18 }

</bundles_post_ra>
